<compile_context>
chip_gen: v7x
topology: tpu7x:2x2x1
jax: 0.10.0
libtpu: 0.0.40
codegen_flags: <defaults>
</compile_context>

<pallas_src>
import math

import jax
import jax.numpy as jnp
from jax import lax
from jax.experimental import pallas as pl
from jax.experimental.pallas import tpu as pltpu


# --------------------------------------------------------------------------- config
class cfg:
    dilation = [(3, 3), (5, 5), (7, 7), (9, 9)]
    sigma = 2.5
    output_hm_shape = (8, 32, 32)      # (D, H, W)
    input_img_shape = (32, 32)         # (H, W)
    focal = (1500.0, 1500.0)
    princpt = (16.0, 16.0)
    camera_3d_size = 2.5


ROOT_JOINT_IDX = 0

# 5-tap gaussian (sigma=1.0), same as kornia.filters.canny's pre-blur
_GB = [math.exp(-(o * o) / 2.0) for o in (-2.0, -1.0, 0.0, 1.0, 2.0)]
_GB = [w / sum(_GB) for w in _GB]


# --------------------------------------------------------------------------- in-kernel helpers
def _make_shift(H, W):
    """Returns shift(x, off, axis): result[.., i, ..] = x[.., clamp(i+off), ..]
    (replicate border), implemented as an XLU roll + one VPU select."""
    row = lax.broadcasted_iota(jnp.int32, (H, W), 0)
    col = lax.broadcasted_iota(jnp.int32, (H, W), 1)
    first_r, last_r = row == 0, row == H - 1
    first_c, last_c = col == 0, col == W - 1

    def shift(x, off, axis):
        n = x.shape[axis]
        rolled = pltpu.roll(x, (-off) % n, axis)           # result[i] = x[(i+off) % n]
        if axis == 0:
            m = last_r if off == 1 else first_r
        else:
            m = last_c if off == 1 else first_c
        return jnp.where(m, x, rolled)                     # fix the wrapped edge

    return shift


def _dilate3x3(x, shift):
    """3x3 morphological dilation (neighborhood max clipped to the image), separable."""
    r = jnp.maximum(jnp.maximum(shift(x, -1, 1), x), shift(x, 1, 1))
    return jnp.maximum(jnp.maximum(shift(r, -1, 0), r), shift(r, 1, 0))


# --------------------------------------------------------------------------- kernels
def _canny_kernel(grayp_ref, d5_ref):
    """Fused 5x5 gaussian blur, sobel magnitude, 5x5 dilation (the only output
    Model.forward consumes from canny_edge).

    grayp_ref: (1, H+4, W+4)  grayscale image, reflect-padded by 2 (blur halo)
    d5_ref   : (1, H, W)      5x5 dilation of the sobel gradient magnitude
    """
    H, W = d5_ref.shape[1], d5_ref.shape[2]
    grayp = grayp_ref[0]                                     # (H+4, W+4)

    # separable 5-tap gaussian blur (valid conv on the reflect-padded gray)
    tmp = _GB[0] * grayp[:, 0:W]
    for t in range(1, 5):
        tmp = tmp + _GB[t] * grayp[:, t:t + W]               # (H+4, W)
    blur = _GB[0] * tmp[0:H, :]
    for t in range(1, 5):
        blur = blur + _GB[t] * tmp[t:t + H, :]               # (H, W)

    shift = _make_shift(H, W)

    # sobel gradient magnitude (replicate border, unnormalized kernel as in
    # kornia.canny's spatial_gradient(normalized=False)), separable form
    dcol = shift(blur, 1, 1) - shift(blur, -1, 1)
    gx = shift(dcol, -1, 0) + 2.0 * dcol + shift(dcol, 1, 0)
    drow = shift(blur, 1, 0) - shift(blur, -1, 0)
    gy = shift(drow, -1, 1) + 2.0 * drow + shift(drow, 1, 1)
    mag = jnp.sqrt(gx * gx + gy * gy + 1e-6)

    # 5x5 dilation == two incremental 3x3 dilations (geodesic border)
    d3 = _dilate3x3(mag, shift)
    d5_ref[0] = _dilate3x3(d3, shift)
    # TODO(synk): kornia canny's second output (NMS + hysteresis edge map) and the
    # 3x3/7x7/9x9 dilations are unused by Model.forward and are not computed.


def _heatmap_kernel(coord_ref, mask_ref, colsel_ref, rowsel_ref, out_ref):
    """Separable 2D gaussian heatmaps for the whole batch, lane-dense layout.

    coord_ref : (B*J, 3)       joint coords (x, y, .) in heatmap space
    mask_ref  : (B*J, 1)       joint validity mask
    colsel_ref: (Wm, Hm*Wm)    one-hot column selector  (n % Wm == w)
    rowsel_ref: (Hm, Hm*Wm)    one-hot row    selector  (n // Wm == h)
    out_ref   : (B*J, Hm*Wm)   flattened heatmaps
    """
    Hm, Wm = cfg.output_hm_shape[1], cfg.output_hm_shape[2]
    BJ = out_ref.shape[0]
    c = -1.0 / (2.0 * cfg.sigma * cfg.sigma)

    jx = coord_ref[:, 0:1]                                   # (BJ, 1)
    jy = coord_ref[:, 1:2]
    m = mask_ref[:, 0:1]

    wv = lax.broadcasted_iota(jnp.int32, (BJ, Wm), 1).astype(jnp.float32)
    hv = lax.broadcasted_iota(jnp.int32, (BJ, Hm), 1).astype(jnp.float32)
    dx = wv - jx
    dy = hv - jy
    gx = jnp.exp(dx * dx * c) * m                            # (BJ, Wm)  mask folded in
    gy = jnp.exp(dy * dy * c)                                # (BJ, Hm)

    # broadcast each factor to the flat (BJ, Hm*Wm) layout via tiny one-hot matmuls
    gxf = jnp.dot(gx, colsel_ref[...], preferred_element_type=jnp.float32)
    gyf = jnp.dot(gy, rowsel_ref[...], preferred_element_type=jnp.float32)
    out_ref[...] = gxf * gyf                                 # one unmasked 1024-lane store


# --------------------------------------------------------------------------- wrappers
def canny_edge_forward(img):
    """JAX/Pallas port of `canny_edge.forward` restricted to the outputs the model
    consumes: tuple index 2 (dilation of canny magnitude with ones(5,5)) and x_out5."""
    B, _, H, W = img.shape
    # TODO(synk): RandomChannelShuffle(p=0.75)/ColorJitter are stochastic train-time
    # augmentations; treated as identity (apply_color_jitter defaults to False).
    x_out5 = img

    imgf = img.astype(jnp.float32)
    # bgr_to_rgb + rgb_to_grayscale == luma weights applied to the BGR channels
    gray = 0.299 * imgf[:, 2] + 0.587 * imgf[:, 1] + 0.114 * imgf[:, 0]    # (B, H, W)
    # reflect pad (kornia gaussian_blur2d default border) for the blur halo
    gray_pad = jnp.pad(gray, ((0, 0), (2, 2), (2, 2)), mode="reflect")

    d5 = pl.pallas_call(
        _canny_kernel,
        out_shape=jax.ShapeDtypeStruct((B, H, W), jnp.float32),
        grid=(B,),
        in_specs=[pl.BlockSpec((1, H + 4, W + 4), lambda b: (b, 0, 0))],
        out_specs=pl.BlockSpec((1, H, W), lambda b: (b, 0, 0)),
        # toy shapes: single-core; switch to "parallel" for large H/W/B configs
        compiler_params=pltpu.CompilerParams(dimension_semantics=("arbitrary",)),
    )(gray_pad)

    return d5[:, None, :, :], x_out5


def make_2d_gaussian_heatmap(joint_coord_img, joints_mask):
    B, J, _ = joint_coord_img.shape
    Hm, Wm = cfg.output_hm_shape[1], cfg.output_hm_shape[2]
    N = Hm * Wm

    n = jnp.arange(N, dtype=jnp.int32)
    colsel = (n[None, :] % Wm == jnp.arange(Wm, dtype=jnp.int32)[:, None]
              ).astype(jnp.float32)                          # (Wm, N)
    rowsel = (n[None, :] // Wm == jnp.arange(Hm, dtype=jnp.int32)[:, None]
              ).astype(jnp.float32)                          # (Hm, N)

    coord = joint_coord_img.reshape(B * J, 3).astype(jnp.float32)
    mask = joints_mask.reshape(B * J, 1).astype(jnp.float32)

    hm = pl.pallas_call(
        _heatmap_kernel,
        out_shape=jax.ShapeDtypeStruct((B * J, N), jnp.float32),
    )(coord, mask, colsel, rowsel)
    return hm.reshape(B, J, Hm, Wm)


def get_camera_trans(cam_param):
    # tiny elementwise glue, kept in plain JAX
    t_xy = cam_param[:, :2]
    gamma = jax.nn.sigmoid(cam_param[:, 2])
    k_value = math.sqrt(cfg.focal[0] * cfg.focal[1] * cfg.camera_3d_size ** 2
                        / (cfg.input_img_shape[0] * cfg.input_img_shape[1]))
    t_z = k_value * gamma
    return jnp.concatenate([t_xy, t_z[:, None]], axis=1)


def get_coord(mesh_cam, joint_regressor):
    # Kept in plain JAX per perf review: a pallas_call here is pure launch/DMA
    # overhead for an (J,V)x(V,3) matmul plus a few dozen elementwise ops.
    mesh = mesh_cam.astype(jnp.float32)
    reg = joint_regressor.astype(jnp.float32)
    joint_cam = jnp.einsum("jv,bvc->bjc", reg, mesh)         # (B, J, 3)
    z = joint_cam[..., 2] + 1e-4
    x = joint_cam[..., 0] / z * cfg.focal[0] + cfg.princpt[0]
    y = joint_cam[..., 1] / z * cfg.focal[1] + cfg.princpt[1]
    x = x / cfg.input_img_shape[1] * cfg.output_hm_shape[2]
    y = y / cfg.input_img_shape[0] * cfg.output_hm_shape[1]
    joint_proj = jnp.stack([x, y], axis=2)
    mesh_cam_render = mesh                                   # verbatim (un-centered) copy
    root = joint_cam[:, ROOT_JOINT_IDX:ROOT_JOINT_IDX + 1, :]
    return joint_proj, joint_cam - root, mesh - root, mesh_cam_render


def model_forward(inputs, meta_info, synthetic, joint_regressor):
    img = inputs["img"]
    # torch: `_, _, x_out3, _, _, _ = self.ced(img)`  -> tuple index 2 == 5x5 dilation
    x_out3, _x_out5 = canny_edge_forward(img)
    concat_input1 = jnp.concatenate([img, x_out3], axis=1)    # (B, 4, H, W)

    # TODO(synk): backbone, pose2feat, position_net, rotation_net, vposer and
    # rot6d_to_axis_angle are external undefined submodules; their outputs are
    # replaced by the deterministic `synthetic` tensors below (not computed).

    joint_coord_img = inputs["joints"]
    joint_heatmap = make_2d_gaussian_heatmap(joint_coord_img, inputs["joints_mask"])

    cam_param = synthetic["cam_param"]            # would come from rotation_net
    cam_trans = get_camera_trans(cam_param)

    # TODO(synk): SMPL/MANO human_model_layer not available; mesh_cam is synthetic.
    mesh_cam_in = synthetic["mesh_cam"]
    joint_proj, joint_cam, mesh_cam, mesh_cam_render = get_coord(mesh_cam_in,
                                                                 joint_regressor)

    out = {
        "canny_edge": x_out3,
        "concat_input1": concat_input1,
        "joint_heatmap": joint_heatmap,
        "cam_param": cam_param,
        "cam_trans": cam_trans,
        "input_joints": joint_coord_img,
        "joint_proj": joint_proj,
        "joint_cam": joint_cam,
        "smpl_mesh_cam": mesh_cam,
        "mesh_cam_render": mesh_cam_render,
    }
    return out


# --------------------------------------------------------------------------- main
if __name__ == "__main__":
    key = jax.random.PRNGKey(0)
    k1, k2, k3, k4, k5 = jax.random.split(key, 5)

    B, H, W = 2, cfg.input_img_shape[0], cfg.input_img_shape[1]
    J, V = 8, 32

    img = jax.random.uniform(k1, (B, 3, H, W), jnp.float32)
    joints = jax.random.uniform(k2, (B, J, 3), jnp.float32) * jnp.array(
        [cfg.output_hm_shape[2], cfg.output_hm_shape[1], 1.0], jnp.float32)
    joints_mask = jnp.ones((B, J, 1), jnp.float32)

    cam_param = jax.random.normal(k3, (B, 3), jnp.float32)
    mesh_cam = jax.random.normal(k4, (B, V, 3), jnp.float32) \
        + jnp.array([0.0, 0.0, 5.0], jnp.float32)

    # deterministic "parameter": joint regressor (rows sum to 1)
    joint_regressor = jax.random.uniform(k5, (J, V), jnp.float32)
    joint_regressor = joint_regressor / jnp.sum(joint_regressor, axis=1, keepdims=True)

    out = model_forward(
        inputs={"img": img, "joints": joints, "joints_mask": joints_mask},
        meta_info={},
        synthetic={"cam_param": cam_param, "mesh_cam": mesh_cam},
        joint_regressor=joint_regressor,
    )
    jax.block_until_ready(out)
    print("KERNEL_OK")
</pallas_src>

<mosaic_0001>
module attributes {stable_mosaic.version = 11 : i64} {
  func.func @_canny_kernel(%arg0: i32, %arg1: memref<1x36x36xf32, #tpu.memory_space<vmem>>, %arg2: memref<1x32x32xf32, #tpu.memory_space<vmem>>) attributes {dimension_semantics = [#tpu.dimension_semantics<arbitrary>], iteration_bounds = array<i64: 2>, scalar_prefetch = 0 : i64, scratch_operands = 0 : i64, tpu.core_type = #tpu.core_type<tc>, window_params = [{transform_indices = @transform_0, window_bounds = array<i64: 1, 36, 36>}, {transform_indices = @transform_1, window_bounds = array<i64: 1, 32, 32>}]} {
    %c0 = arith.constant 0 : index
    %c0_0 = arith.constant 0 : index
    %c0_1 = arith.constant 0 : index
    %0 = vector.load %arg1[%c0, %c0_0, %c0_1] : memref<1x36x36xf32, #tpu.memory_space<vmem>>, vector<1x36x36xf32>
    %1 = vector.shape_cast %0 : vector<1x36x36xf32> to vector<36x36xf32>
    %2 = vector.extract_strided_slice %1 {offsets = [0, 0], sizes = [36, 32], strides = [1, 1]} : vector<36x36xf32> to vector<36x32xf32>
    %cst = arith.constant 0.054488685 : f32
    %3 = vector.broadcast %cst : f32 to vector<36x32xf32>
    %4 = arith.mulf %3, %2 : vector<36x32xf32>
    %5 = vector.extract_strided_slice %1 {offsets = [0, 1], sizes = [36, 32], strides = [1, 1]} : vector<36x36xf32> to vector<36x32xf32>
    %cst_2 = arith.constant 0.244201347 : f32
    %6 = vector.broadcast %cst_2 : f32 to vector<36x32xf32>
    %7 = arith.mulf %6, %5 : vector<36x32xf32>
    %8 = arith.addf %4, %7 : vector<36x32xf32>
    %9 = vector.extract_strided_slice %1 {offsets = [0, 2], sizes = [36, 32], strides = [1, 1]} : vector<36x36xf32> to vector<36x32xf32>
    %cst_3 = arith.constant 0.402619958 : f32
    %10 = vector.broadcast %cst_3 : f32 to vector<36x32xf32>
    %11 = arith.mulf %10, %9 : vector<36x32xf32>
    %12 = arith.addf %8, %11 : vector<36x32xf32>
    %13 = vector.extract_strided_slice %1 {offsets = [0, 3], sizes = [36, 32], strides = [1, 1]} : vector<36x36xf32> to vector<36x32xf32>
    %cst_4 = arith.constant 0.244201347 : f32
    %14 = vector.broadcast %cst_4 : f32 to vector<36x32xf32>
    %15 = arith.mulf %14, %13 : vector<36x32xf32>
    %16 = arith.addf %12, %15 : vector<36x32xf32>
    %17 = vector.extract_strided_slice %1 {offsets = [0, 4], sizes = [36, 32], strides = [1, 1]} : vector<36x36xf32> to vector<36x32xf32>
    %cst_5 = arith.constant 0.054488685 : f32
    %18 = vector.broadcast %cst_5 : f32 to vector<36x32xf32>
    %19 = arith.mulf %18, %17 : vector<36x32xf32>
    %20 = arith.addf %16, %19 : vector<36x32xf32>
    %21 = vector.extract_strided_slice %20 {offsets = [0, 0], sizes = [32, 32], strides = [1, 1]} : vector<36x32xf32> to vector<32x32xf32>
    %cst_6 = arith.constant 0.054488685 : f32
    %22 = vector.broadcast %cst_6 : f32 to vector<32x32xf32>
    %23 = arith.mulf %22, %21 : vector<32x32xf32>
    %24 = vector.extract_strided_slice %20 {offsets = [1, 0], sizes = [32, 32], strides = [1, 1]} : vector<36x32xf32> to vector<32x32xf32>
    %cst_7 = arith.constant 0.244201347 : f32
    %25 = vector.broadcast %cst_7 : f32 to vector<32x32xf32>
    %26 = arith.mulf %25, %24 : vector<32x32xf32>
    %27 = arith.addf %23, %26 : vector<32x32xf32>
    %28 = vector.extract_strided_slice %20 {offsets = [2, 0], sizes = [32, 32], strides = [1, 1]} : vector<36x32xf32> to vector<32x32xf32>
    %cst_8 = arith.constant 0.402619958 : f32
    %29 = vector.broadcast %cst_8 : f32 to vector<32x32xf32>
    %30 = arith.mulf %29, %28 : vector<32x32xf32>
    %31 = arith.addf %27, %30 : vector<32x32xf32>
    %32 = vector.extract_strided_slice %20 {offsets = [3, 0], sizes = [32, 32], strides = [1, 1]} : vector<36x32xf32> to vector<32x32xf32>
    %cst_9 = arith.constant 0.244201347 : f32
    %33 = vector.broadcast %cst_9 : f32 to vector<32x32xf32>
    %34 = arith.mulf %33, %32 : vector<32x32xf32>
    %35 = arith.addf %31, %34 : vector<32x32xf32>
    %36 = vector.extract_strided_slice %20 {offsets = [4, 0], sizes = [32, 32], strides = [1, 1]} : vector<36x32xf32> to vector<32x32xf32>
    %cst_10 = arith.constant 0.054488685 : f32
    %37 = vector.broadcast %cst_10 : f32 to vector<32x32xf32>
    %38 = arith.mulf %37, %36 : vector<32x32xf32>
    %39 = arith.addf %35, %38 : vector<32x32xf32>
    %40 = tpu.iota {dimensions = array<i32: 0>} : vector<32x32xi32>
    %41 = tpu.iota {dimensions = array<i32: 1>} : vector<32x32xi32>
    %c0_i32 = arith.constant 0 : i32
    %42 = vector.broadcast %c0_i32 : i32 to vector<32x32xi32>
    %43 = arith.cmpi eq, %40, %42 : vector<32x32xi32>
    %c31_i32 = arith.constant 31 : i32
    %44 = vector.broadcast %c31_i32 : i32 to vector<32x32xi32>
    %45 = arith.cmpi eq, %40, %44 : vector<32x32xi32>
    %c0_i32_11 = arith.constant 0 : i32
    %46 = vector.broadcast %c0_i32_11 : i32 to vector<32x32xi32>
    %47 = arith.cmpi eq, %41, %46 : vector<32x32xi32>
    %c31_i32_12 = arith.constant 31 : i32
    %48 = vector.broadcast %c31_i32_12 : i32 to vector<32x32xi32>
    %49 = arith.cmpi eq, %41, %48 : vector<32x32xi32>
    %c31_i32_13 = arith.constant 31 : i32
    %50 = tpu.dynamic_rotate %39 by %c31_i32_13 dim 1 : vector<32x32xf32>, i32 -> vector<32x32xf32>
    %51 = arith.select %49, %39, %50 : vector<32x32xi1>, vector<32x32xf32>
    %c1_i32 = arith.constant 1 : i32
    %52 = tpu.dynamic_rotate %39 by %c1_i32 dim 1 : vector<32x32xf32>, i32 -> vector<32x32xf32>
    %53 = arith.select %47, %39, %52 : vector<32x32xi1>, vector<32x32xf32>
    %54 = arith.subf %51, %53 : vector<32x32xf32>
    %c1_i32_14 = arith.constant 1 : i32
    %55 = tpu.dynamic_rotate %54 by %c1_i32_14 dim 0 : vector<32x32xf32>, i32 -> vector<32x32xf32>
    %56 = arith.select %43, %54, %55 : vector<32x32xi1>, vector<32x32xf32>
    %cst_15 = arith.constant 2.000000e+00 : f32
    %57 = vector.broadcast %cst_15 : f32 to vector<32x32xf32>
    %58 = arith.mulf %57, %54 : vector<32x32xf32>
    %59 = arith.addf %56, %58 : vector<32x32xf32>
    %c31_i32_16 = arith.constant 31 : i32
    %60 = tpu.dynamic_rotate %54 by %c31_i32_16 dim 0 : vector<32x32xf32>, i32 -> vector<32x32xf32>
    %61 = arith.select %45, %54, %60 : vector<32x32xi1>, vector<32x32xf32>
    %62 = arith.addf %59, %61 : vector<32x32xf32>
    %c31_i32_17 = arith.constant 31 : i32
    %63 = tpu.dynamic_rotate %39 by %c31_i32_17 dim 0 : vector<32x32xf32>, i32 -> vector<32x32xf32>
    %64 = arith.select %45, %39, %63 : vector<32x32xi1>, vector<32x32xf32>
    %c1_i32_18 = arith.constant 1 : i32
    %65 = tpu.dynamic_rotate %39 by %c1_i32_18 dim 0 : vector<32x32xf32>, i32 -> vector<32x32xf32>
    %66 = arith.select %43, %39, %65 : vector<32x32xi1>, vector<32x32xf32>
    %67 = arith.subf %64, %66 : vector<32x32xf32>
    %c1_i32_19 = arith.constant 1 : i32
    %68 = tpu.dynamic_rotate %67 by %c1_i32_19 dim 1 : vector<32x32xf32>, i32 -> vector<32x32xf32>
    %69 = arith.select %47, %67, %68 : vector<32x32xi1>, vector<32x32xf32>
    %cst_20 = arith.constant 2.000000e+00 : f32
    %70 = vector.broadcast %cst_20 : f32 to vector<32x32xf32>
    %71 = arith.mulf %70, %67 : vector<32x32xf32>
    %72 = arith.addf %69, %71 : vector<32x32xf32>
    %c31_i32_21 = arith.constant 31 : i32
    %73 = tpu.dynamic_rotate %67 by %c31_i32_21 dim 1 : vector<32x32xf32>, i32 -> vector<32x32xf32>
    %74 = arith.select %49, %67, %73 : vector<32x32xi1>, vector<32x32xf32>
    %75 = arith.addf %72, %74 : vector<32x32xf32>
    %76 = arith.mulf %62, %62 : vector<32x32xf32>
    %77 = arith.mulf %75, %75 : vector<32x32xf32>
    %78 = arith.addf %76, %77 : vector<32x32xf32>
    %cst_22 = arith.constant 9.99999997E-7 : f32
    %79 = vector.broadcast %cst_22 : f32 to vector<32x32xf32>
    %80 = arith.addf %78, %79 : vector<32x32xf32>
    %81 = math.sqrt %80 : vector<32x32xf32>
    %c1_i32_23 = arith.constant 1 : i32
    %82 = tpu.dynamic_rotate %81 by %c1_i32_23 dim 1 : vector<32x32xf32>, i32 -> vector<32x32xf32>
    %83 = arith.select %47, %81, %82 : vector<32x32xi1>, vector<32x32xf32>
    %84 = arith.maximumf %83, %81 : vector<32x32xf32>
    %c31_i32_24 = arith.constant 31 : i32
    %85 = tpu.dynamic_rotate %81 by %c31_i32_24 dim 1 : vector<32x32xf32>, i32 -> vector<32x32xf32>
    %86 = arith.select %49, %81, %85 : vector<32x32xi1>, vector<32x32xf32>
    %87 = arith.maximumf %84, %86 : vector<32x32xf32>
    %c1_i32_25 = arith.constant 1 : i32
    %88 = tpu.dynamic_rotate %87 by %c1_i32_25 dim 0 : vector<32x32xf32>, i32 -> vector<32x32xf32>
    %89 = arith.select %43, %87, %88 : vector<32x32xi1>, vector<32x32xf32>
    %90 = arith.maximumf %89, %87 : vector<32x32xf32>
    %c31_i32_26 = arith.constant 31 : i32
    %91 = tpu.dynamic_rotate %87 by %c31_i32_26 dim 0 : vector<32x32xf32>, i32 -> vector<32x32xf32>
    %92 = arith.select %45, %87, %91 : vector<32x32xi1>, vector<32x32xf32>
    %93 = arith.maximumf %90, %92 : vector<32x32xf32>
    %c1_i32_27 = arith.constant 1 : i32
    %94 = tpu.dynamic_rotate %93 by %c1_i32_27 dim 1 : vector<32x32xf32>, i32 -> vector<32x32xf32>
    %95 = arith.select %47, %93, %94 : vector<32x32xi1>, vector<32x32xf32>
    %96 = arith.maximumf %95, %93 : vector<32x32xf32>
    %c31_i32_28 = arith.constant 31 : i32
    %97 = tpu.dynamic_rotate %93 by %c31_i32_28 dim 1 : vector<32x32xf32>, i32 -> vector<32x32xf32>
    %98 = arith.select %49, %93, %97 : vector<32x32xi1>, vector<32x32xf32>
    %99 = arith.maximumf %96, %98 : vector<32x32xf32>
    %c1_i32_29 = arith.constant 1 : i32
    %100 = tpu.dynamic_rotate %99 by %c1_i32_29 dim 0 : vector<32x32xf32>, i32 -> vector<32x32xf32>
    %101 = arith.select %43, %99, %100 : vector<32x32xi1>, vector<32x32xf32>
    %102 = arith.maximumf %101, %99 : vector<32x32xf32>
    %c31_i32_30 = arith.constant 31 : i32
    %103 = tpu.dynamic_rotate %99 by %c31_i32_30 dim 0 : vector<32x32xf32>, i32 -> vector<32x32xf32>
    %104 = arith.select %45, %99, %103 : vector<32x32xi1>, vector<32x32xf32>
    %105 = arith.maximumf %102, %104 : vector<32x32xf32>
    %c0_31 = arith.constant 0 : index
    %c0_32 = arith.constant 0 : index
    %c0_33 = arith.constant 0 : index
    %106 = vector.load %arg2[%c0_31, %c0_32, %c0_33] : memref<1x32x32xf32, #tpu.memory_space<vmem>>, vector<1x32x32xf32>
    %107 = vector.shape_cast %106 : vector<1x32x32xf32> to vector<32x32xf32>
    %108 = vector.shape_cast %105 : vector<32x32xf32> to vector<1x32x32xf32>
    tpu.vector_store %arg2[%c0_31, %c0_32, %c0_33], %108 {strides = array<i32>} : memref<1x32x32xf32, #tpu.memory_space<vmem>>, vector<1x32x32xf32>,
    return
  }
  func.func @transform_0(%arg0: i32) -> (i32, i32, i32) {
    %c0_i32 = arith.constant 0 : i32
    %c0_i32_0 = arith.constant 0 : i32
    %c0_i32_1 = arith.constant 0 : i32
    return %arg0, %c0_i32, %c0_i32_0 : i32, i32, i32
  }
  func.func @transform_1(%arg0: i32) -> (i32, i32, i32) {
    %c0_i32 = arith.constant 0 : i32
    %c0_i32_0 = arith.constant 0 : i32
    %c0_i32_1 = arith.constant 0 : i32
    return %arg0, %c0_i32, %c0_i32_0 : i32, i32, i32
  }
}

</mosaic_0001>

<bundles_post_ra>
// kernel: tpu_custom_call.1
= control target key start
LH: loop header
LB: loop body
LE: loop exit
PB: predicated region body
PF: predicated region fallthrough
CT: control target
= control target key end

     0   :  { %6 = vsyncpa [#allocation3], 0  ;;  %s1509_s0 = inlined_call_operand.vmem [shape: f32[2,36,36], index: 0, kind: input, shape index: {}]   ;;  %s1510_s1 = inlined_call_operand.hbm [shape: f32[2,32,32], index: 1, kind: output, shape index: {}]  }
   0x1   :  { %8 = vsyncpa [#allocation3 + $0x1], 0  ;;  %s1028_s6 = smov 0   ;;  %s1030_s7 = smov 0  }
   0x2   :  { %s1032_s8 = smov 0   ;;  %s1034_s9 = smov 0  }
   0x3 LB: > { %s1049_s10 = sadd.s32 4294967295, %s1007_s9   ;;  %s877_s11 = sadd.s32 4294967294, %s1007_s9   ;;  %s1007_s9 = sphi %s1034_s9, %s1516_s9   ;;  %s1003_s8 = sphi %s1032_s8, %s1515_s8   ;;  %s999_s7 = sphi %s1030_s7, %s1514_s7   ;;  %s995_s6 = sphi %s1028_s6, %s1513_s6  }
   0x4   : > { %s1053_s12 = sadd.s32 1, %s1007_s9   ;;  %s47_s13 = sadd.s32 1, %s1003_s8 }
   0x5   : > { %s44_s14 = ssub.s32 %s1007_s9, %s1053_s12  ;;  %p57_p0 = scmp.ne.s32.totalorder %s1003_s8, %s999_s7 }
   0x6   : > { %p45_p1 = scmp.eq.s32.totalorder %s44_s14, 0  ;;  %p58_p2 = scmp.eq.s32.totalorder %s1049_s10, 1 }
   0x7   : > { %p63_p3 = scmp.ne.s32.totalorder %s999_s7, %s995_s6  ;;  %p64_p4 = scmp.eq.s32.totalorder %s877_s11, 1 }
   0x8   : > { %s1064_s15 = scalar_select %p45_p1, %s1003_s8, %s47_s13  }
   0x9   : > { %p1066_p5 = por %p58_p2, %p57_p0  ;;  %p1070_p6 = por %p64_p4, %p63_p3 }
   0xa   : > { %p880_p7 = scmp.ge.s32.totalorder %s1007_s9, 1  ;;  %p90_p8 = scmp.lt.s32.totalorder %s1007_s9, 3 }
   0xc   : > { %p91_p9 = pnand %p880_p7, %p90_p8 }
   0xd   : > { %p110_p10 = scmp.lt.s32.totalorder (!%p91_p9), %s1049_s10, 1  ;;  %s1009_s23 = smov (!%p91_p9), 127   ;;  %v332_v45 = vlaneseq (!%p91_p9)  ;;  %vm244_vm0 = vcmask (!%p91_p9), 1046528   ;;  %vm272_vm1 = vcmask (!%p91_p9), 1045504   ;;  %vm290_vm2 = vcmask (!%p91_p9), 1044480  }
   0xe   : > { %94 = sbr.rel (%p91_p9) target bundleno = 1349 (0x545), region = 24  ;;  %s1010_s24 = smov (!%p91_p9), 126   ;;  %vm314_vm3 = vcmask (!%p91_p9), 1043456   ;;  %vm349_vm8 = vcmask (!%p91_p9), 1047808  }
   0xf   : > { %s1011_s25 = smov (!%p91_p9), 125   ;;  %s1012_s26 = smov (!%p91_p9), 124   ;;  %v1087_v57 = vshrl.u32 (!%p91_p9), %v332_v45, 7 }
  0x10   : > { %s1013_s27 = smov (!%p91_p9), 32   ;;  %s1014_s28 = smov (!%p91_p9), 97  }
  0x11   : > { %vm339_vm4 = vcmp.eq.s32.totalorder (!%p91_p9), %v1087_v57, 0  ;;  %vm418_vm5 = vcmp.lt.s32.totalorder (!%p91_p9), %v1087_v57, 1  ;;  %vm439_vm6 = vcmp.lt.s32.totalorder (!%p91_p9), %v1087_v57, 7  ;;  %s107_s29 = sand.u32 (!%p91_p9), 1, %s999_s7   ;;  %s888_s2 = sshll.u32 (!%p91_p9), %s1049_s10, 9 }
  0x12   : > { %s881_s30 = sshll.u32 (!%p91_p9), %s107_s29, 5  ;;  %s1459_s11 = scalar_lea.hbm (!%p91_p9), %s1510_s1, %s888_s2 }
  0x13   : > { %s109_s3 = scalar_lea.vmem (!%p91_p9), [#allocation2], %s881_s30  ;;  %s1468_s13 = scalar_lea.sflag (!%p91_p9), [#allocation3], %s107_s29 }
  0x14   : > { %s815_s4 = sshll.u32 (!%p91_p9), %s109_s3, 4  ;;  %s1461_s4 = int_to_ptr.vmem [resolvable:$true] %s815_s4 }
  0x15   : > { %s111_s18 = scalar_select %p110_p10, %s1049_s10, 1 }
  0x16   : > { %s945_s14 = scalar_lea.vmem %s1461_s4, 512 }
  0x17   : > { %s889_s19 = smul.u32 40, %s111_s18  ;;  %p946_p11 = scmp.ne.s32.totalorder %s1461_s4, %s945_s14 }
  0x18   : > { %s1015_s18 = smov [#allocation2]  }
  0x19   : > { %s114_s22 = scalar_lea.vmem %s1509_s0, %s889_s19  ;;  %p947_p12 = pnand %p946_p11, %p1066_p5 }
  0x1a   : > { %v118_v0 = vld [vmem:[%s114_s22 + $0x18] sm:$0xff]  ;;  %v115_v1 = vld [vmem:[%s114_s22] sm:$0xff]  ;;  %v116_v5 = vld [vmem:[%s114_s22 + $0x8] sm:$0xff]  ;;  %s949_s19 = sshll.u32 %s1015_s18, 4  ;;  %s950_s19 = int_to_ptr.vmem [resolvable:$false] %s949_s19 }
  0x1b   : > { %v119_v2 = vld [vmem:[%s114_s22 + $0x20] sm:$0xf]  ;;  %v128_v3 = vmul.f32 0.24420135, %v118_v0  ;;  %v125_v4 = vmul.f32 0.24420135, %v115_v1  ;;  %p948_p13 = pneg %p947_p12  ;;  %p952_p0 = scmp.lt.s32.totalorder %s1461_s4, %s950_s19 }
  0x1c   : > { %v129_v6 = vmul.f32 0.24420135, %v119_v2  ;;  %v126_v7 = vmul.f32 0.24420135, %v116_v5  ;;  %v117_v8 = vld [vmem:[%s114_s22 + $0x10] sm:$0xff]  ;;  %s951_s20 = scalar_lea.vmem %s950_s19, 1024 }
  0x1d   : > { %141 = vrot.lane.b32.xlu1 %v128_v3, %s1009_s23  ;;  %135 = vrot.lane.b32.xlu0 %v125_v4, %s1009_s23  ;;  %v155_v9 = vmul.f32 0.40261996, %v115_v1  ;;  %v127_v10 = vmul.f32 0.24420135, %v117_v8  ;;  %v158_v11 = vmul.f32 0.40261996, %v118_v0  ;;  %p953_p1 = scmp.lt.s32.totalorder %s951_s20, %s945_s14 }
  0x1e   : > { %v156_v12 = vmul.f32 0.40261996, %v116_v5  ;;  %v157_v13 = vmul.f32 0.40261996, %v117_v8  ;;  %v159_v14 = vmul.f32 0.40261996, %v119_v2 }
  0x1f   : > { %v120_v15 = vmul.f32 0.054488685, %v115_v1  ;;  %v121_v16 = vmul.f32 0.054488685, %v116_v5  ;;  %v123_v17 = vmul.f32 0.054488685, %v118_v0  ;;  %p954_p2 = por %p953_p1, %p952_p0 }
  0x20   : > { %v124_v18 = vmul.f32 0.054488685, %v119_v2  ;;  %v122_v19 = vmul.f32 0.054488685, %v117_v8 }
  0x21   : > { %143 = vrot.lane.b32.xlu1 %v129_v6, %s1009_s23  ;;  %137 = vrot.lane.b32.xlu0 %v126_v7, %s1009_s23  ;;  %p955_p3 = pnand %p954_p2, %p948_p13 }
  0x25   : > { %165 = vrot.lane.b32.xlu1 %v155_v9, %s1010_s24  ;;  %139 = vrot.lane.b32.xlu0 %v127_v10, %s1009_s23 }
  0x29   : > { %171 = vrot.lane.b32.xlu1 %v158_v11, %s1010_s24  ;;  %167 = vrot.lane.b32.xlu0 %v156_v12, %s1010_s24 }
  0x2d   : > { %169 = vrot.lane.b32.xlu1 %v157_v13, %s1010_s24  ;;  %173 = vrot.lane.b32.xlu0 %v159_v14, %s1010_s24 }
  0x31   : > { %187 = vrot.lane.b32.xlu1 %v126_v7, %s1011_s25  ;;  %185 = vrot.lane.b32.xlu0 %v125_v4, %s1011_s25 }
  0x35   : > { %193 = vrot.lane.b32.xlu1 %v129_v6, %s1011_s25  ;;  %191 = vrot.lane.b32.xlu0 %v128_v3, %s1011_s25 }
  0x39   : > { %189 = vrot.lane.b32.xlu0 %v127_v10, %s1011_s25  ;;  %210 = vrot.lane.b32.xlu1 %v120_v15, %s1012_s26  ;;  %v1095_v10 = vadd.s32 24, %v1087_v57 }
  0x3b   : > { %vm346_vm7 = vcmp.eq.s32.totalorder %v1095_v10, 31 }
  0x3d   : > { %212 = vrot.lane.b32.xlu0 %v121_v16, %s1012_s26  ;;  %216 = vrot.lane.b32.xlu1 %v123_v17, %s1012_s26 }
  0x41   : > { %218 = vrot.lane.b32.xlu0 %v124_v18, %s1012_s26  ;;  %214 = vrot.lane.b32.xlu1 %v122_v19, %s1012_s26 }
  0x8f   : > { %v142_v20 = vpop.permute.xlu1 %141  ;;  %v136_v21 = vpop.permute.xlu0 %135 }
  0x90   : > { %v150_v32 = vadd.f32 %v136_v21, %v120_v15  ;;  %v153_v37 = vadd.f32 %v142_v20, %v123_v17 }
  0x93   : > { %v144_v22 = vpop.permute.xlu1 %143  ;;  %v138_v23 = vpop.permute.xlu0 %137 }
  0x94   : > { %v151_v38 = vadd.f32 %v138_v23, %v121_v16  ;;  %v154_v44 = vadd.f32 %v144_v22, %v124_v18 }
  0x97   : > { %v166_v24 = vpop.permute.xlu1 %165  ;;  %v140_v25 = vpop.permute.xlu0 %139 }
  0x98   : > { %v180_v35 = vadd.f32 %v166_v24, %v150_v32  ;;  %v152_v54 = vadd.f32 %v140_v25, %v122_v19 }
  0x9b   : > { %v172_v26 = vpop.permute.xlu1 %171  ;;  %v168_v27 = vpop.permute.xlu0 %167 }
  0x9c   : > { %v183_v42 = vadd.f32 %v172_v26, %v153_v37  ;;  %v181_v43 = vadd.f32 %v168_v27, %v151_v38 }
  0x9f   : > { %v170_v28 = vpop.permute.xlu1 %169  ;;  %v174_v29 = vpop.permute.xlu0 %173 }
  0xa0   : > { %v184_v50 = vadd.f32 %v174_v29, %v154_v44  ;;  %v182_v62 = vadd.f32 %v170_v28, %v152_v54 }
  0xa3   : > { %v188_v30 = vpop.permute.xlu1 %187  ;;  %v186_v31 = vpop.permute.xlu0 %185 }
  0xa4   : > { %v200_v36 = vadd.f32 %v186_v31, %v180_v35  ;;  %v201_v46 = vadd.f32 %v188_v30, %v181_v43 }
  0xa7   : > { %v194_v33 = vpop.permute.xlu1 %193  ;;  %v192_v34 = vpop.permute.xlu0 %191 }
  0xa8   : > { %v203_v47 = vadd.f32 %v192_v34, %v183_v42  ;;  %v204_v55 = vadd.f32 %v194_v33, %v184_v50 }
  0xab   : > { %v190_v39 = vpop.permute.xlu0 %189  ;;  %v211_v40 = vpop.permute.xlu1 %210 }
  0xac   : > { %v225_v41 = vadd.f32 %v211_v40, %v200_v36  ;;  %v202_v6 = vadd.f32 %v190_v39, %v182_v62 }
  0xae   : > { %v234_v51 = vmul.f32 0.24420135, %v225_v41  ;;  %v262_v56 = vmul.f32 0.40261996, %v225_v41  ;;  %v230_v58 = vmul.f32 0.054488685, %v225_v41 }
  0xaf   : > { %v213_v48 = vpop.permute.xlu0 %212  ;;  %v217_v49 = vpop.permute.xlu1 %216 }
  0xb0   : > { %v226_v52 = vadd.f32 %v213_v48, %v201_v46  ;;  %v228_v53 = vadd.f32 %v217_v49, %v203_v47  ;;  %v245_v63 = vrot.slane %v234_v51, 1  ;;  %v273_v7 = vrot.slane %v262_v56, 2 }
  0xb1   : > { %v291_v8 = vrot.slane %v234_v51, 3  ;;  %v315_v11 = vrot.slane %v230_v58, 4 }
  0xb2   : > { %v1089_v59 = vmul.f32 0.24420135, %v226_v52  ;;  %v263_v60 = vmul.f32 0.40261996, %v226_v52  ;;  %v1091_v0 = vmul.f32 0.054488685, %v226_v52 }
  0xb3   : > { %v219_v61 = vpop.permute.xlu0 %218  ;;  %v237_v4 = vmul.f32 0.24420135, %v228_v53  ;;  %v265_v5 = vmul.f32 0.40261996, %v228_v53  ;;  %v215_v9 = vpop.permute.xlu1 %214  ;;  %v233_v14 = vmul.f32 0.054488685, %v228_v53 }
  0xb4   : > { %v229_v1 = vadd.f32 %v219_v61, %v204_v55  ;;  %v246_v2 = vrot.slane %v1089_v59, 1  ;;  %v274_v3 = vrot.slane %v263_v60, 2  ;;  %v292_v13 = vrot.slane %v1089_v59, 3 }
  0xb5   : > { %v316_v16 = vrot.slane %v1091_v0, 4  ;;  %v250_v20 = vrot.slane %v237_v4, 1  ;;  %v278_v21 = vrot.slane %v265_v5, 2  ;;  %v227_v22 = vadd.f32 %v215_v9, %v202_v6 }
  0xb6   : > { %v247_v12 = vsel %vm244_vm0, %v245_v63, %v246_v2  ;;  %v238_v17 = vmul.f32 0.24420135, %v229_v1  ;;  %v266_v18 = vmul.f32 0.40261996, %v229_v1  ;;  %v275_v19 = vsel %vm272_vm1, %v273_v7, %v274_v3 }
  0xb7   : > { %v258_v15 = vadd.f32 %v247_v12, %v230_v58  ;;  %v308_v26 = vmul.f32 0.054488685, %v229_v1  ;;  %v293_v27 = vsel %vm290_vm2, %v291_v8, %v292_v13  ;;  %v296_v28 = vrot.slane %v237_v4, 3 }
  0xb8   : > { %v252_v24 = vrot.slane %v238_v17, 1  ;;  %v280_v25 = vrot.slane %v266_v18, 2  ;;  %v320_v29 = vrot.slane %v233_v14, 4  ;;  %v236_v30 = vmul.f32 0.24420135, %v227_v22 }
  0xb9   : > { %v286_v23 = vadd.f32 %v275_v19, %v258_v15  ;;  %v298_v33 = vrot.slane %v238_v17, 3  ;;  %v232_v34 = vmul.f32 0.054488685, %v227_v22  ;;  %v317_v35 = vsel %vm314_vm3, %v315_v11, %v316_v16 }
  0xba   : > { %v253_v32 = vsel %vm244_vm0, %v250_v20, %v252_v24  ;;  %v248_v37 = vrot.slane %v236_v30, 1  ;;  %v264_v38 = vmul.f32 0.40261996, %v227_v22  ;;  %v281_v40 = vsel %vm272_vm1, %v278_v21, %v280_v25 }
  0xbb   : > { %v304_v31 = vadd.f32 %v293_v27, %v286_v23  ;;  %v261_v36 = vadd.f32 %v253_v32, %v233_v14  ;;  %v322_v41 = vrot.slane %v308_v26, 4  ;;  %v294_v42 = vrot.slane %v236_v30, 3 }
  0xbc   : > { %v249_v44 = vsel %vm244_vm0, %v246_v2, %v248_v37  ;;  %v251_v46 = vsel %vm244_vm0, %v248_v37, %v250_v20  ;;  %v276_v47 = vrot.slane %v264_v38, 2  ;;  %v299_v48 = vsel %vm290_vm2, %v296_v28, %v298_v33 }
  0xbd   : > { %v1105_v39 = vadd.f32 %v317_v35, %v304_v31  ;;  %v289_v43 = vadd.f32 %v281_v40, %v261_v36  ;;  %v259_v49 = vadd.f32 %v249_v44, %v1091_v0  ;;  %v260_v50 = vadd.f32 %v251_v46, %v232_v34 }
  0xbe   : > { %v318_v51 = vrot.slane %v232_v34, 4  ;;  %v277_v53 = vsel %vm272_vm1, %v274_v3, %v276_v47  ;;  %v279_v54 = vsel %vm272_vm1, %v276_v47, %v278_v21  ;;  %v323_v55 = vsel %vm314_vm3, %v320_v29, %v322_v41 }
  0xbf   : > { %350 = vrot.lane.b32.xlu0 %v1105_v39, %s1013_s27  ;;  %v307_v52 = vadd.f32 %v299_v48, %v289_v43  ;;  %v287_v56 = vadd.f32 %v277_v53, %v259_v49  ;;  %v288_v58 = vadd.f32 %v279_v54, %v260_v50  ;;  %v295_v60 = vsel %vm290_vm2, %v292_v13, %v294_v42 }
  0xc0   : > { %v297_v61 = vsel %vm290_vm2, %v294_v42, %v296_v28  ;;  %v319_v0 = vsel %vm314_vm3, %v316_v16, %v318_v51  ;;  %v321_v1 = vsel %vm314_vm3, %v318_v51, %v320_v29  ;;  %v452_v2 = vrot.slane %v1105_v39, 1 }
  0xc1   : > { %v1119_v59 = vadd.f32 %v323_v55, %v307_v52  ;;  %v305_v62 = vadd.f32 %v295_v60, %v287_v56  ;;  %v306_v63 = vadd.f32 %v297_v61, %v288_v58  ;;  %v464_v3 = vrot.slane %v1105_v39, 7 }
  0xc2   : > { %vm796_vm3 = vcmask 261120  }
  0xc3   : > { %359 = vrot.lane.b32.xlu1 %v1119_v59, %s1013_s27  ;;  %v467_v4 = vrot.slane %v1119_v59, 7  ;;  %v455_v5 = vrot.slane %v1119_v59, 1  ;;  %v1132_v6 = vadd.f32 %v319_v0, %v305_v62  ;;  %v1134_v7 = vadd.f32 %v321_v1, %v306_v63 }
  0xc4   : > { %v1239_v0 = vand.u32 127, %v332_v45 }
  0xc5   : > { %v471_v8 = vsel %vm418_vm5, %v467_v4, %v464_v3  ;;  %v459_v9 = vsel %vm439_vm6, %v455_v5, %v452_v2  ;;  %356 = vrot.lane.b32.xlu0 %v1134_v7, %s1013_s27  ;;  %v453_v11 = vrot.slane %v1132_v6, 1  ;;  %v466_v14 = vrot.slane %v1134_v7, 7 }
  0xc6   : > { %v472_v12 = vsel %vm339_vm4, %v1105_v39, %v471_v8  ;;  %v463_v13 = vsel %vm346_vm7, %v1119_v59, %v459_v9  ;;  %v454_v15 = vrot.slane %v1134_v7, 1  ;;  %v465_v16 = vrot.slane %v1132_v6, 7 }
  0xc7   : > { %353 = vrot.lane.b32.xlu1 %v1132_v6, %s1013_s27  ;;  %v458_v17 = vsel %vm439_vm6, %v452_v2, %v453_v11  ;;  %v468_v18 = vsel %vm418_vm5, %v466_v14, %v467_v4  ;;  %vm347_vm9 = vcmp.eq.s32.totalorder %v1239_v0, 0  ;;  %vm348_vm10 = vcmp.eq.s32.totalorder %v1239_v0, 31 }
  0xc8   : > { %v1158_v19 = vsub.f32 %v458_v17, %v472_v12  ;;  %v1160_v20 = vsub.f32 %v463_v13, %v468_v18  ;;  %v456_v21 = vsel %vm439_vm6, %v454_v15, %v455_v5  ;;  %v469_v22 = vsel %vm418_vm5, %v465_v16, %v466_v14 }
  0xc9   : > { %v457_v23 = vsel %vm439_vm6, %v453_v11, %v454_v15  ;;  %v470_v24 = vsel %vm418_vm5, %v464_v3, %v465_v16  ;;  %v1174_v25 = vsub.f32 %v456_v21, %v469_v22 }
  0xca   : > { %480 = vrot.lane.b32.xlu0 %v1158_v19, %s1013_s27  ;;  %v1176_v26 = vsub.f32 %v457_v23, %v470_v24 }
  0xcb   : > { %489 = vrot.lane.b32.xlu1 %v1160_v20, %s1013_s27 }
  0xce   : > { %486 = vrot.lane.b32.xlu0 %v1174_v25, %s1013_s27 }
  0xcf   : > { %483 = vrot.lane.b32.xlu1 %v1176_v26, %s1013_s27 }
 0x131   : > { %v351_v27 = vpop.permute.xlu0 %350 }
 0x132   : > { %v352_v28 = vsel %vm349_vm8, %v351_v27, %v1105_v39 }
 0x133   : > { %362 = vrot.lane.b32.xlu0 %v352_v28, %s1013_s27 }
 0x135   : > { %v360_v29 = vpop.permute.xlu1 %359 }
 0x136   : > { %v361_v30 = vsel %vm349_vm8, %v360_v29, %v1119_v59 }
 0x137   : > { %368 = vrot.lane.b32.xlu1 %v361_v30, %s1013_s27  ;;  %v357_v31 = vpop.permute.xlu0 %356 }
 0x138   : > { %v358_v32 = vsel %vm349_vm8, %v357_v31, %v1134_v7 }
 0x139   : > { %v354_v33 = vpop.permute.xlu1 %353  ;;  %366 = vrot.lane.b32.xlu0 %v358_v32, %s1013_s27 }
 0x13a   : > { %v355_v34 = vsel %vm349_vm8, %v354_v33, %v1132_v6 }
 0x13b   : > { %364 = vrot.lane.b32.xlu1 %v355_v34, %s1013_s27 }
 0x13c   : > { %v481_v35 = vpop.permute.xlu0 %480 }
 0x13d   : > { %v490_v36 = vpop.permute.xlu1 %489  ;;  %v482_v37 = vsel %vm349_vm8, %v481_v35, %v1158_v19 }
 0x13e   : > { %v491_v38 = vsel %vm349_vm8, %v490_v36, %v1160_v20  ;;  %492 = vrot.lane.b32.xlu0 %v482_v37, %s1013_s27 }
 0x13f   : > { %498 = vrot.lane.b32.xlu1 %v491_v38, %s1013_s27 }
 0x140   : > { %v487_v40 = vpop.permute.xlu0 %486 }
 0x141   : > { %v484_v41 = vpop.permute.xlu1 %483  ;;  %v488_v42 = vsel %vm349_vm8, %v487_v40, %v1174_v25  ;;  %v526_v40 = vmul.f32 2.0, %v1174_v25 }
 0x142   : > { %v485_v43 = vsel %vm349_vm8, %v484_v41, %v1176_v26  ;;  %496 = vrot.lane.b32.xlu0 %v488_v42, %s1013_s27 }
 0x143   : > { %494 = vrot.lane.b32.xlu1 %v485_v43, %s1013_s27 }
 0x1a5   : > { %v363_v44 = vpop.permute.xlu0 %362 }
 0x1a6   : > { %v370_v46 = vsel %vm349_vm8, %v363_v44, %v1105_v39 }
 0x1a7   : > { %378 = vrot.lane.b32.xlu0 %v370_v46, %s1009_s23 }
 0x1a9   : > { %v369_v47 = vpop.permute.xlu1 %368 }
 0x1aa   : > { %v373_v48 = vsel %vm349_vm8, %v369_v47, %v1119_v59 }
 0x1ab   : > { %394 = vrot.lane.b32.xlu0 %v370_v46, %s1014_s28  ;;  %384 = vrot.lane.b32.xlu1 %v373_v48, %s1009_s23  ;;  %v367_v49 = vpop.permute.xlu0 %366 }
 0x1ac   : > { %v372_v51 = vsel %vm349_vm8, %v367_v49, %v1134_v7 }
 0x1ad   : > { %v365_v50 = vpop.permute.xlu1 %364 }
 0x1ae   : > { %v371_v54 = vsel %vm349_vm8, %v365_v50, %v1132_v6 }
 0x1af   : > { %382 = vrot.lane.b32.xlu0 %v372_v51, %s1009_s23  ;;  %400 = vrot.lane.b32.xlu1 %v373_v48, %s1014_s28 }
 0x1b0   : > { %v493_v52 = vpop.permute.xlu0 %492 }
 0x1b1   : > { %v499_v53 = vpop.permute.xlu1 %498  ;;  %v500_v61 = vsel %vm349_vm8, %v493_v52, %v1158_v19 }
 0x1b2   : > { %v503_v62 = vsel %vm349_vm8, %v499_v53, %v1160_v20 }
 0x1b3   : > { %380 = vrot.lane.b32.xlu0 %v371_v54, %s1009_s23  ;;  %398 = vrot.lane.b32.xlu1 %v372_v51, %s1014_s28 }
 0x1b4   : > { %v497_v55 = vpop.permute.xlu0 %496 }
 0x1b5   : > { %v502_v56 = vsel %vm349_vm8, %v497_v55, %v1174_v25  ;;  %v495_v58 = vpop.permute.xlu1 %494 }
 0x1b6   : > { %v501_v60 = vsel %vm349_vm8, %v495_v58, %v1176_v26 }
 0x1b7   : > { %396 = vrot.lane.b32.xlu1 %v371_v54, %s1014_s28  ;;  %512 = vrot.lane.b32.xlu0 %v502_v56, %s1014_s28 }
 0x1bb   : > { %510 = vrot.lane.b32.xlu1 %v501_v60, %s1014_s28  ;;  %508 = vrot.lane.b32.xlu0 %v500_v61, %s1014_s28 }
 0x1bf   : > { %514 = vrot.lane.b32.xlu1 %v503_v62, %s1014_s28  ;;  %532 = vrot.lane.b32.xlu0 %v500_v61, %s1009_s23 }
 0x1c3   : > { %538 = vrot.lane.b32.xlu1 %v503_v62, %s1009_s23  ;;  %536 = vrot.lane.b32.xlu0 %v502_v56, %s1009_s23  ;;  %v527_v62 = vmul.f32 2.0, %v1160_v20 }
 0x1c7   : > { %534 = vrot.lane.b32.xlu1 %v501_v60, %s1009_s23 }
 0x219   : > { %v379_v63 = vpop.permute.xlu0 %378 }
 0x21a   : > { %v390_v8 = vsel %vm348_vm10, %v1105_v39, %v379_v63 }
 0x21d   : > { %v395_v1 = vpop.permute.xlu0 %394  ;;  %v385_v2 = vpop.permute.xlu1 %384 }
 0x21e   : > { %v406_v3 = vsel %vm347_vm9, %v1105_v39, %v395_v1  ;;  %v393_v45 = vsel %vm348_vm10, %v1119_v59, %v385_v2 }
 0x21f   : > { %v410_v11 = vsub.f32 %v390_v8, %v406_v3 }
 0x221   : > { %v383_v4 = vpop.permute.xlu0 %382  ;;  %v401_v5 = vpop.permute.xlu1 %400  ;;  %v414_v17 = vrot.slane %v410_v11, 7  ;;  %v435_v30 = vrot.slane %v410_v11, 1  ;;  %v427_v32 = vmul.f32 2.0, %v410_v11 }
 0x222   : > { %v409_v9 = vsel %vm347_vm9, %v1119_v59, %v401_v5  ;;  %v392_v16 = vsel %vm348_vm10, %v1134_v7, %v383_v4 }
 0x223   : > { %v413_v12 = vsub.f32 %v393_v45, %v409_v9 }
 0x225   : > { %v381_v13 = vpop.permute.xlu0 %380  ;;  %v417_v14 = vrot.slane %v413_v12, 7  ;;  %v399_v15 = vpop.permute.xlu1 %398  ;;  %v438_v24 = vrot.slane %v413_v12, 1  ;;  %v430_v38 = vmul.f32 2.0, %v413_v12 }
 0x226   : > { %v408_v39 = vsel %vm347_vm9, %v1134_v7, %v399_v15  ;;  %v391_v27 = vsel %vm348_vm10, %v1132_v6, %v381_v13  ;;  %v524_v7 = vmul.f32 2.0, %v1158_v19 }
 0x227   : > { %v412_v18 = vsub.f32 %v392_v16, %v408_v39  ;;  %v422_v59 = vsel %vm418_vm5, %v417_v14, %v414_v17  ;;  %v443_v41 = vsel %vm439_vm6, %v438_v24, %v435_v30 }
 0x228   : > { %v423_v31 = vsel %vm339_vm4, %v410_v11, %v422_v59  ;;  %v447_v1 = vsel %vm346_vm7, %v413_v12, %v443_v41 }
 0x229   : > { %v416_v21 = vrot.slane %v412_v18, 7  ;;  %v397_v22 = vpop.permute.xlu1 %396  ;;  %v513_v23 = vpop.permute.xlu0 %512  ;;  %v429_v42 = vmul.f32 2.0, %v412_v18  ;;  %v437_v43 = vrot.slane %v412_v18, 1  ;;  %v431_v44 = vadd.f32 %v427_v32, %v423_v31 }
 0x22a   : > { %v407_v28 = vsel %vm347_vm9, %v1132_v6, %v397_v22  ;;  %v522_v48 = vsel %vm347_vm9, %v1174_v25, %v513_v23 }
 0x22b   : > { %v411_v29 = vsub.f32 %v391_v27, %v407_v28  ;;  %v419_v37 = vsel %vm418_vm5, %v416_v21, %v417_v14  ;;  %v530_v61 = vadd.f32 %v526_v40, %v522_v48  ;;  %v440_v5 = vsel %vm439_vm6, %v437_v43, %v438_v24 }
 0x22c   : > { %v434_v49 = vadd.f32 %v430_v38, %v419_v37  ;;  %v525_v14 = vmul.f32 2.0, %v1176_v26 }
 0x22d   : > { %v415_v33 = vrot.slane %v411_v29, 7  ;;  %v436_v34 = vrot.slane %v411_v29, 1  ;;  %v511_v35 = vpop.permute.xlu1 %510  ;;  %v509_v36 = vpop.permute.xlu0 %508  ;;  %v428_v47 = vmul.f32 2.0, %v411_v29 }
 0x22e   : > { %v520_v6 = vsel %vm347_vm9, %v1158_v19, %v509_v36  ;;  %v521_v3 = vsel %vm347_vm9, %v1176_v26, %v511_v35  ;;  %v451_v4 = vadd.f32 %v447_v1, %v434_v49 }
 0x22f   : > { %v442_v46 = vsel %vm439_vm6, %v435_v30, %v436_v34  ;;  %v420_v50 = vsel %vm418_vm5, %v415_v33, %v416_v21  ;;  %v421_v51 = vsel %vm418_vm5, %v414_v17, %v415_v33  ;;  %v528_v52 = vadd.f32 %v524_v7, %v520_v6 }
 0x230   : > { %v448_v54 = vadd.f32 %v442_v46, %v431_v44  ;;  %v433_v56 = vadd.f32 %v429_v42, %v420_v50  ;;  %v432_v2 = vadd.f32 %v428_v47, %v421_v51  ;;  %v441_v18 = vsel %vm439_vm6, %v436_v34, %v437_v43 }
 0x231   : > { %v515_v53 = vpop.permute.xlu1 %514  ;;  %v533_v55 = vpop.permute.xlu0 %532  ;;  %v529_v21 = vadd.f32 %v525_v14, %v521_v3  ;;  %v555_v22 = vmul.f32 %v451_v4, %v451_v4 }
 0x232   : > { %v523_v58 = vsel %vm347_vm9, %v1160_v20, %v515_v53  ;;  %v544_v60 = vsel %vm348_vm10, %v1158_v19, %v533_v55  ;;  %v552_v45 = vmul.f32 %v448_v54, %v448_v54  ;;  %v450_v11 = vadd.f32 %v440_v5, %v433_v56 }
 0x233   : > { %v548_v63 = vadd.f32 %v544_v60, %v528_v52  ;;  %v531_v8 = vadd.f32 %v527_v62, %v523_v58  ;;  %v449_v23 = vadd.f32 %v441_v18, %v432_v2 }
 0x234   : > { %v554_v27 = vmul.f32 %v450_v11, %v450_v11 }
 0x235   : > { %v556_v9 = vmul.f32 %v548_v63, %v548_v63  ;;  %v539_v19 = vpop.permute.xlu1 %538  ;;  %v537_v13 = vpop.permute.xlu0 %536  ;;  %v553_v33 = vmul.f32 %v449_v23, %v449_v23 }
 0x236   : > { %v547_v12 = vsel %vm348_vm10, %v1160_v20, %v539_v19  ;;  %v546_v15 = vsel %vm348_vm10, %v1174_v25, %v537_v13 }
 0x237   : > { %v560_v16 = vadd.f32 %v556_v9, %v552_v45  ;;  %v551_v39 = vadd.f32 %v547_v12, %v531_v8  ;;  %v550_v17 = vadd.f32 %v546_v15, %v530_v61 }
 0x239   : > { %v564_v59 = vadd.f32 1e-06, %v560_v16  ;;  %v559_v24 = vmul.f32 %v551_v39, %v551_v39  ;;  %v558_v28 = vmul.f32 %v550_v17, %v550_v17  ;;  %v535_v29 = vpop.permute.xlu1 %534 }
 0x23a   : > { %v545_v20 = vsel %vm348_vm10, %v1176_v26, %v535_v29 }
 0x23b   : > { %937 = vrsqrt.f32 %v564_v59  ;;  %v563_v25 = vadd.f32 %v559_v24, %v555_v22  ;;  %v562_v30 = vadd.f32 %v558_v28, %v554_v27  ;;  %v549_v7 = vadd.f32 %v545_v20, %v529_v21 }
 0x23c   : > { %vm570_vm11 = vcmp.eq.f32.partialorder %v564_v59, inf  ;;  %v573_v40 = vand.u32 2147483648, %v564_v59  ;;  %vm572_vm12 = vcmp.eq.f32.partialorder %v564_v59, 0.0 }
 0x23d   : > { %v567_v31 = vadd.f32 1e-06, %v563_v25  ;;  %v566_v32 = vadd.f32 1e-06, %v562_v30  ;;  %v557_v34 = vmul.f32 %v549_v7, %v549_v7 }
 0x23f   : > { %939 = vrsqrt.f32 %v567_v31  ;;  %v561_v35 = vadd.f32 %v557_v34, %v553_v33  ;;  %vm591_vm13 = vcmp.eq.f32.partialorder %v567_v31, inf  ;;  %v594_v44 = vand.u32 2147483648, %v567_v31 }
 0x240   : > { %941 = vrsqrt.f32 %v566_v32  ;;  %vm593_vm14 = vcmp.eq.f32.partialorder %v567_v31, 0.0  ;;  %vm584_vm15 = vcmp.eq.f32.partialorder %v566_v32, inf  ;;  %v587_v48 = vand.u32 2147483648, %v566_v32 }
 0x241   : > { %v565_v36 = vadd.f32 1e-06, %v561_v35  ;;  %vm586_vm0 = vcmp.eq.f32.partialorder %v566_v32, 0.0 }
 0x243   : > { %943 = vrsqrt.f32 %v565_v36  ;;  %vm577_vm1 = vcmp.eq.f32.partialorder %v565_v36, inf  ;;  %v580_v54 = vand.u32 2147483648, %v565_v36  ;;  %vm579_vm2 = vcmp.eq.f32.partialorder %v565_v36, 0.0 }
 0x245   : > { %v938_v37 = vpop.eup %937 }
 0x246   : > { %v569_v38 = vmul.f32 %v938_v37, %v564_v59 }
 0x248   : > { %v571_v6 = vsel %vm570_vm11, %v564_v59, %v569_v38 }
 0x249   : > { %v940_v26 = vpop.eup %939  ;;  %v1315_v41 = vsel %vm572_vm12, %v573_v40, %v571_v6 }
 0x24a   : > { %v942_v42 = vpop.eup %941  ;;  %596 = vrot.lane.b32.xlu0 %v1315_v41, %s1013_s27  ;;  %v590_v43 = vmul.f32 %v940_v26, %v567_v31 }
 0x24b   : > { %v583_v46 = vmul.f32 %v942_v42, %v566_v32 }
 0x24c   : > { %v592_v47 = vsel %vm591_vm13, %v567_v31, %v590_v43 }
 0x24d   : > { %v944_v49 = vpop.eup %943  ;;  %v595_v50 = vsel %vm593_vm14, %v594_v44, %v592_v47  ;;  %v585_v51 = vsel %vm584_vm15, %v566_v32, %v583_v46 }
 0x24e   : > { %605 = vrot.lane.b32.xlu1 %v595_v50, %s1013_s27  ;;  %v588_v52 = vsel %vm586_vm0, %v587_v48, %v585_v51  ;;  %v576_v53 = vmul.f32 %v944_v49, %v565_v36 }
 0x24f   : > { %602 = vrot.lane.b32.xlu0 %v588_v52, %s1013_s27 }
 0x250   : > { %v578_v55 = vsel %vm577_vm1, %v565_v36, %v576_v53 }
 0x251   : > { %v581_v56 = vsel %vm579_vm2, %v580_v54, %v578_v55 }
 0x252   : > { %599 = vrot.lane.b32.xlu1 %v581_v56, %s1013_s27 }
 0x2bc   : > { %v597_v58 = vpop.permute.xlu0 %596 }
 0x2bd   : > { %v598_v60 = vsel %vm349_vm8, %v597_v58, %v1315_v41 }
 0x2be   : > { %608 = vrot.lane.b32.xlu0 %v598_v60, %s1013_s27 }
 0x2c0   : > { %v606_v61 = vpop.permute.xlu1 %605 }
 0x2c1   : > { %v603_v62 = vpop.permute.xlu0 %602  ;;  %v607_v63 = vsel %vm349_vm8, %v606_v61, %v595_v50 }
 0x2c2   : > { %614 = vrot.lane.b32.xlu1 %v607_v63, %s1013_s27  ;;  %v604_v1 = vsel %vm349_vm8, %v603_v62, %v588_v52 }
 0x2c3   : > { %612 = vrot.lane.b32.xlu0 %v604_v1, %s1013_s27 }
 0x2c4   : > { %v600_v2 = vpop.permute.xlu1 %599 }
 0x2c5   : > { %v601_v3 = vsel %vm349_vm8, %v600_v2, %v581_v56 }
 0x2c6   : > { %610 = vrot.lane.b32.xlu1 %v601_v3, %s1013_s27 }
 0x330   : > { %v609_v4 = vpop.permute.xlu0 %608 }
 0x331   : > { %v616_v11 = vsel %vm349_vm8, %v609_v4, %v1315_v41 }
 0x334   : > { %v615_v5 = vpop.permute.xlu1 %614 }
 0x335   : > { %v613_v8 = vpop.permute.xlu0 %612  ;;  %v619_v13 = vsel %vm349_vm8, %v615_v5, %v595_v50 }
 0x336   : > { %v618_v45 = vsel %vm349_vm8, %v613_v8, %v588_v52 }
 0x337   : > { %628 = vrot.lane.b32.xlu0 %v618_v45, %s1014_s28 }
 0x338   : > { %v611_v9 = vpop.permute.xlu1 %610 }
 0x339   : > { %v617_v19 = vsel %vm349_vm8, %v611_v9, %v581_v56 }
 0x33a   : > { %626 = vrot.lane.b32.xlu1 %v617_v19, %s1014_s28 }
 0x33b   : > { %624 = vrot.lane.b32.xlu0 %v616_v11, %s1014_s28 }
 0x33e   : > { %630 = vrot.lane.b32.xlu1 %v619_v13, %s1014_s28 }
 0x33f   : > { %644 = vrot.lane.b32.xlu0 %v616_v11, %s1009_s23 }
 0x342   : > { %650 = vrot.lane.b32.xlu1 %v619_v13, %s1009_s23 }
 0x343   : > { %648 = vrot.lane.b32.xlu0 %v618_v45, %s1009_s23 }
 0x346   : > { %646 = vrot.lane.b32.xlu1 %v617_v19, %s1009_s23 }
 0x3a9   : > { %v629_v14 = vpop.permute.xlu0 %628 }
 0x3aa   : > { %v638_v21 = vsel %vm347_vm9, %v588_v52, %v629_v14 }
 0x3ab   : > { %v642_v29 = vmax.f32 %v638_v21, %v588_v52 }
 0x3ac   : > { %v627_v12 = vpop.permute.xlu1 %626 }
 0x3ad   : > { %v625_v15 = vpop.permute.xlu0 %624  ;;  %v637_v59 = vsel %vm347_vm9, %v581_v56, %v627_v12 }
 0x3ae   : > { %v636_v16 = vsel %vm347_vm9, %v1315_v41, %v625_v15  ;;  %v641_v31 = vmax.f32 %v637_v59, %v581_v56 }
 0x3af   : > { %v640_v22 = vmax.f32 %v636_v16, %v1315_v41 }
 0x3b0   : > { %v631_v39 = vpop.permute.xlu1 %630 }
 0x3b1   : > { %v639_v17 = vsel %vm347_vm9, %v595_v50, %v631_v39  ;;  %v645_v18 = vpop.permute.xlu0 %644 }
 0x3b2   : > { %v656_v23 = vsel %vm348_vm10, %v1315_v41, %v645_v18  ;;  %v643_v24 = vmax.f32 %v639_v17, %v595_v50 }
 0x3b3   : > { %v660_v27 = vmax.f32 %v640_v22, %v656_v23 }
 0x3b4   : > { %v651_v28 = vpop.permute.xlu1 %650 }
 0x3b5   : > { %v659_v20 = vsel %vm348_vm10, %v595_v50, %v651_v28  ;;  %v649_v25 = vpop.permute.xlu0 %648  ;;  %v664_v33 = vrot.slane %v660_v27, 7  ;;  %v680_v34 = vrot.slane %v660_v27, 1 }
 0x3b6   : > { %v663_v30 = vmax.f32 %v643_v24, %v659_v20  ;;  %v658_v7 = vsel %vm348_vm10, %v588_v52, %v649_v25 }
 0x3b7   : > { %v662_v32 = vmax.f32 %v642_v29, %v658_v7 }
 0x3b8   : > { %v667_v35 = vrot.slane %v663_v30, 7  ;;  %v683_v36 = vrot.slane %v663_v30, 1  ;;  %v647_v37 = vpop.permute.xlu1 %646 }
 0x3b9   : > { %v666_v38 = vrot.slane %v662_v32, 7  ;;  %v657_v40 = vsel %vm348_vm10, %v581_v56, %v647_v37  ;;  %v682_v44 = vrot.slane %v662_v32, 1 }
 0x3ba   : > { %v671_v6 = vsel %vm418_vm5, %v667_v35, %v664_v33  ;;  %v687_v26 = vsel %vm439_vm6, %v683_v36, %v680_v34  ;;  %v661_v41 = vmax.f32 %v641_v31, %v657_v40 }
 0x3bb   : > { %v691_v42 = vsel %vm346_vm7, %v663_v30, %v687_v26  ;;  %v668_v43 = vsel %vm418_vm5, %v666_v38, %v667_v35  ;;  %v672_v46 = vsel %vm339_vm4, %v660_v27, %v671_v6  ;;  %v684_v56 = vsel %vm439_vm6, %v682_v44, %v683_v36 }
 0x3bc   : > { %v679_v47 = vmax.f32 %v668_v43, %v663_v30  ;;  %v665_v48 = vrot.slane %v661_v41, 7  ;;  %v676_v49 = vmax.f32 %v672_v46, %v660_v27  ;;  %v681_v50 = vrot.slane %v661_v41, 1 }
 0x3be   : > { %v695_v51 = vmax.f32 %v679_v47, %v691_v42  ;;  %v669_v52 = vsel %vm418_vm5, %v665_v48, %v666_v38  ;;  %v670_v53 = vsel %vm418_vm5, %v664_v33, %v665_v48  ;;  %v686_v55 = vsel %vm439_vm6, %v680_v34, %v681_v50 }
 0x3bf   : > { %v678_v54 = vmax.f32 %v669_v52, %v662_v32  ;;  %v677_v58 = vmax.f32 %v670_v53, %v661_v41  ;;  %v692_v60 = vmax.f32 %v676_v49, %v686_v55  ;;  %v685_v62 = vsel %vm439_vm6, %v681_v50, %v682_v44 }
 0x3c0   : > { %705 = vrot.lane.b32.xlu1 %v695_v51, %s1013_s27 }
 0x3c1   : > { %v694_v61 = vmax.f32 %v678_v54, %v684_v56  ;;  %696 = vrot.lane.b32.xlu0 %v692_v60, %s1013_s27  ;;  %v1385_v63 = vmax.f32 %v677_v58, %v685_v62 }
 0x3c4   : > { %702 = vrot.lane.b32.xlu1 %v694_v61, %s1013_s27 }
 0x3c5   : > { %699 = vrot.lane.b32.xlu0 %v1385_v63, %s1013_s27 }
 0x432   : > { %v706_v1 = vpop.permute.xlu1 %705 }
 0x433   : > { %v707_v2 = vsel %vm349_vm8, %v706_v1, %v695_v51  ;;  %v697_v3 = vpop.permute.xlu0 %696 }
 0x434   : > { %714 = vrot.lane.b32.xlu1 %v707_v2, %s1013_s27  ;;  %v698_v4 = vsel %vm349_vm8, %v697_v3, %v692_v60 }
 0x435   : > { %708 = vrot.lane.b32.xlu0 %v698_v4, %s1013_s27 }
 0x436   : > { %v703_v5 = vpop.permute.xlu1 %702 }
 0x437   : > { %v704_v8 = vsel %vm349_vm8, %v703_v5, %v694_v61  ;;  %v700_v45 = vpop.permute.xlu0 %699 }
 0x438   : > { %712 = vrot.lane.b32.xlu1 %v704_v8, %s1013_s27  ;;  %v701_v9 = vsel %vm349_vm8, %v700_v45, %v1385_v63 }
 0x439   : > { %710 = vrot.lane.b32.xlu0 %v701_v9, %s1013_s27 }
 0x4a6   : > { %v715_v19 = vpop.permute.xlu1 %714 }
 0x4a7   : > { %v709_v11 = vpop.permute.xlu0 %708  ;;  %v719_v16 = vsel %vm349_vm8, %v715_v19, %v695_v51 }
 0x4a8   : > { %v716_v39 = vsel %vm349_vm8, %v709_v11, %v692_v60 }
 0x4aa   : > { %v713_v13 = vpop.permute.xlu1 %712 }
 0x4ab   : > { %v718_v14 = vsel %vm349_vm8, %v713_v13, %v694_v61  ;;  %v711_v12 = vpop.permute.xlu0 %710 }
 0x4ac   : > { %728 = vrot.lane.b32.xlu1 %v718_v14, %s1014_s28  ;;  %v717_v15 = vsel %vm349_vm8, %v711_v12, %v1385_v63 }
 0x4ad   : > { %726 = vrot.lane.b32.xlu0 %v717_v15, %s1014_s28 }
 0x4b0   : > { %730 = vrot.lane.b32.xlu1 %v719_v16, %s1014_s28 }
 0x4b1   : > { %724 = vrot.lane.b32.xlu0 %v716_v39, %s1014_s28 }
 0x4b4   : > { %750 = vrot.lane.b32.xlu1 %v719_v16, %s1009_s23 }
 0x4b5   : > { %744 = vrot.lane.b32.xlu0 %v716_v39, %s1009_s23 }
 0x4b8   : > { %748 = vrot.lane.b32.xlu1 %v718_v14, %s1009_s23 }
 0x4b9   : > { %746 = vrot.lane.b32.xlu0 %v717_v15, %s1009_s23 }
 0x51e   : > { %v729_v17 = vpop.permute.xlu1 %728 }
 0x51f   : > { %v727_v18 = vpop.permute.xlu0 %726  ;;  %v738_v28 = vsel %vm347_vm9, %v694_v61, %v729_v17 }
 0x520   : > { %v742_v31 = vmax.f32 %v738_v28, %v694_v61  ;;  %v737_v32 = vsel %vm347_vm9, %v1385_v63, %v727_v18 }
 0x521   : > { %v741_v26 = vmax.f32 %v737_v32, %v1385_v63 }
 0x522   : > { %v731_v21 = vpop.permute.xlu1 %730 }
 0x523   : > { %v739_v22 = vsel %vm347_vm9, %v695_v51, %v731_v21  ;;  %v725_v23 = vpop.permute.xlu0 %724 }
 0x524   : > { %v736_v59 = vsel %vm347_vm9, %v692_v60, %v725_v23  ;;  %v743_v24 = vmax.f32 %v739_v22, %v695_v51 }
 0x525   : > { %v740_v20 = vmax.f32 %v736_v59, %v692_v60 }
 0x526   : > { %v751_v27 = vpop.permute.xlu1 %750 }
 0x527   : > { %v759_v29 = vsel %vm348_vm10, %v695_v51, %v751_v27  ;;  %v745_v30 = vpop.permute.xlu0 %744 }
 0x528   : > { %v763_v25 = vmax.f32 %v743_v24, %v759_v29  ;;  %v756_v7 = vsel %vm348_vm10, %v692_v60, %v745_v30 }
 0x529   : > { %v760_v33 = vmax.f32 %v740_v20, %v756_v7 }
 0x52a   : > { %v749_v34 = vpop.permute.xlu1 %748  ;;  %v767_v36 = vrot.slane %v763_v25, 7  ;;  %v783_v41 = vrot.slane %v763_v25, 1 }
 0x52b   : > { %v758_v35 = vsel %vm348_vm10, %v694_v61, %v749_v34  ;;  %v764_v37 = vrot.slane %v760_v33, 7  ;;  %v780_v38 = vrot.slane %v760_v33, 1  ;;  %v747_v6 = vpop.permute.xlu0 %746 }
 0x52c   : > { %v762_v40 = vmax.f32 %v742_v31, %v758_v35  ;;  %v757_v42 = vsel %vm348_vm10, %v1385_v63, %v747_v6 }
 0x52d   : > { %v771_v43 = vsel %vm418_vm5, %v767_v36, %v764_v37  ;;  %v787_v47 = vsel %vm439_vm6, %v783_v41, %v780_v38  ;;  %v761_v48 = vmax.f32 %v741_v26, %v757_v42 }
 0x52e   : > { %v766_v44 = vrot.slane %v762_v40, 7  ;;  %v772_v46 = vsel %vm339_vm4, %v760_v33, %v771_v43  ;;  %v782_v50 = vrot.slane %v762_v40, 1  ;;  %v791_v54 = vsel %vm346_vm7, %v763_v25, %v787_v47 }
 0x52f   : > { %v776_v51 = vmax.f32 %v772_v46, %v760_v33  ;;  %v765_v53 = vrot.slane %v761_v48, 7  ;;  %v781_v0 = vrot.slane %v761_v48, 1 }
 0x530   : > { %v768_v49 = vsel %vm418_vm5, %v766_v44, %v767_v36  ;;  %v784_v10 = vsel %vm439_vm6, %v782_v50, %v783_v41 }
 0x531   : > { %v779_v52 = vmax.f32 %v768_v49, %v763_v25  ;;  %v769_v56 = vsel %vm418_vm5, %v765_v53, %v766_v44  ;;  %v770_v58 = vsel %vm418_vm5, %v764_v37, %v765_v53  ;;  %v786_v62 = vsel %vm439_vm6, %v780_v38, %v781_v0 }
 0x532   : > { %v777_v60 = vmax.f32 %v770_v58, %v761_v48  ;;  %v778_v61 = vmax.f32 %v769_v56, %v762_v40  ;;  %v785_v63 = vsel %vm439_vm6, %v781_v0, %v782_v50  ;;  %v792_v1 = vmax.f32 %v776_v51, %v786_v62 }
 0x533   : > { %v795_v55 = vmax.f32 %v779_v52, %v791_v54 }
 0x534   : > { %v793_v2 = vmax.f32 %v777_v60, %v785_v63  ;;  %v794_v3 = vmax.f32 %v778_v61, %v784_v10  ;;  %797 = vst.msk [vmem:[%s109_s3] sm:$0xff] %vm796_vm3, %v792_v1 }
 0x535   : > { %800 = vst.msk [vmem:[%s109_s3 + $0x18] sm:$0xff] %vm796_vm3, %v795_v55 }
 0x536   : > { %798 = vst.msk [vmem:[%s109_s3 + $0x8] sm:$0xff] %vm796_vm3, %v793_v2  ;;  %799 = vst.msk [vmem:[%s109_s3 + $0x10] sm:$0xff] %vm796_vm3, %v794_v3 }
 0x537   : > { %958 = shalt.err (!%p955_p3)
}
 0x538   : > { %s959_s21 = scalar_lea.hbm %s1459_s11, 512  ;;  %s963_s24 = scalar_lea.hbm %s1510_s1, 1024 }
 0x539   : > { %p960_p4 = scmp.ne.s32.totalorder %s1459_s11, %s959_s21  ;;  %p964_p9 = scmp.lt.u32.totalorder %s1459_s11, %s1510_s1 }
 0x53a   : > { %p965_p10 = scmp.lt.u32.totalorder %s963_s24, %s959_s21  ;;  %p967_p12 = scmp.lt.u32.totalorder %s959_s21, %s1459_s11 }
 0x53b   : > { %p961_p7 = pnand %p960_p4, %p1066_p5 }
 0x53c   : > { %p966_p11 = por %p965_p10, %p964_p9 }
 0x53d   : > { %p962_p8 = pneg %p961_p7 }
 0x53e   : > { %p968_p13 = por %p967_p12, %p966_p11 }
 0x540   : > { %p969_p0 = pnand %p968_p13, %p962_p8 }
 0x542   : > { %972 = shalt.err (!%p969_p0)
}
 0x543   : > { %s1016_s27 = smov 128   ;;  %s1017_s28 = smov 8  }
 0x544   : > { %890 = dma.vmem_to_hbm [thread:$0]  (%p1066_p5), %s1461_s4, 512, %s1459_s11, %s1468_s13, %s1016_s27, %s1016_s27, %s1017_s28  }
 0x545 PF: > { %p896_p1 = scmp.ge.s32.totalorder %s1007_s9, 2  ;;  %s830_s29 = sand.u32 1, %s995_s6  }
 0x546   : > { %s831_s30 = scalar_lea.sflag [#allocation3], %s830_s29 }
 0x547   : > { %p893_p2 = pnand %p896_p1, %p1070_p6 }
 0x549   : > { %990 = dma.done.wait (!%p893_p2), %s831_s30, 512  }
 0x54a   : > { %992 = vsyncadd (!%p893_p2), %s831_s30, 4294966784  ;;  %p11_p3 = scmp.ge.s32.totalorder %s1053_s12, 4   ;;  %s1513_s6 = smov %s999_s7 }
 0x54b   : > { %s1514_s7 = smov %s1003_s8  ;;  %s1515_s8 = smov %s1064_s15 }
 0x54c   : > { %s1516_s9 = smov %s1053_s12  ;;  %13 = sbr.rel (!%p11_p3) target bundleno = 3 (0x3), region = 59 }
 0x553   :  { %836 = vsyncpa [#allocation3], 1 }
 0x554   :  { %838 = vsyncpa [#allocation3 + $0x1], 1 }

</bundles_post_ra>
